<compile_context>
chip_gen: v7x
topology: tpu7x:2x2x1
jax: 0.10.0
libtpu: 0.0.40
codegen_flags: <defaults>
</compile_context>

<pallas_src>
import functools

import jax
import jax.numpy as jnp
from jax.experimental import pallas as pl
from jax.experimental.pallas import tpu as pltpu


def _ce_smooth_kernel(preds_ref, gts_ref, out_ref, *, w_gt, w_all, n_valid, tn):
    pid = pl.program_id(0)

    preds = preds_ref[...]            # (TN, C), input dtype (f32 or bf16)
    gts = gts_ref[...]                # (TN, 1) int32
    tnn, c = preds.shape

    # (1, C) class ids; broadcast against (TN, 1) gts inside the compare so no
    # (TN, C) int32 iota is ever materialized.
    class_ids = jax.lax.broadcasted_iota(jnp.int32, (1, c), 1)

    # Row reductions straight off the streamed tile; every (TN, C) expression
    # below has exactly one consumer (its reduce), so it fuses into the reduce
    # instead of binding a tile-sized temporary in VMEM.
    m = jnp.max(preds, axis=1, keepdims=True).astype(jnp.float32)         # (TN,1)
    sum_exp = jnp.sum(jnp.exp(preds - m), axis=1, keepdims=True)          # (TN,1) f32
    lse = m + jnp.log(sum_exp)                                            # (TN,1)

    preds_gt = jnp.sum(jnp.where(class_ids == gts, preds, 0),
                       axis=1, keepdims=True, dtype=jnp.float32)          # (TN,1)
    sum_p = jnp.sum(preds, axis=1, keepdims=True, dtype=jnp.float32)      # (TN,1)

    per_row = -(w_gt * (preds_gt - lse) + w_all * (sum_p - c * lse))      # (TN,1)

    # Zero out rows that are padding past the true batch size.
    row_ids = pid * tn + jax.lax.broadcasted_iota(jnp.int32, (tnn, 1), 0)
    per_row = jnp.where(row_ids < n_valid, per_row, 0.0)

    # Lane-dense (8, 128) partial-sum block: scalar tile sum at [0, 0].
    partial = jnp.sum(per_row)
    r = jax.lax.broadcasted_iota(jnp.int32, (8, 128), 0)
    l = jax.lax.broadcasted_iota(jnp.int32, (8, 128), 1)
    out_ref[...] = jnp.where((r == 0) & (l == 0), partial, 0.0)


def _vmem_budgets():
    """Per-chip (per-input-buffer byte budget, scoped vmem limit)."""
    try:
        cap = getattr(pltpu.get_tpu_info(), "vmem_capacity_bytes",
                      64 * 1024 * 1024)
    except Exception:  # be conservative if the query is unavailable
        cap = 64 * 1024 * 1024
    if cap >= 100 * 1024 * 1024:                      # v5e / v6e: 128 MiB VMEM
        return 20 * 1024 * 1024, 100 * 1024 * 1024
    return 5 * 1024 * 1024, 48 * 1024 * 1024          # v7x: 64 MiB per TC


def _ce_xla(preds, gts, w_gt, w_all):
    """Plain-XLA path, used when C < 128 (the vreg is 128 lanes wide, so the
    Pallas kernel would run at <= C/128 of peak vector throughput there)."""
    preds = preds.astype(jnp.float32)
    c = preds.shape[1]
    lse = jax.nn.logsumexp(preds, axis=1, keepdims=True)
    p_gt = jnp.take_along_axis(preds, gts[:, None], axis=1)
    sum_p = jnp.sum(preds, axis=1, keepdims=True)
    per_row = -(w_gt * (p_gt - lse) + w_all * (sum_p - c * lse))
    return jnp.mean(per_row)


def cross_entropy_loss(preds, gts, smoothing=True, force_pallas=None):
    """preds: (N, C) float (f32/bf16); gts: (N,) int. Returns scalar f32 mean loss."""
    n, c = preds.shape
    gts = gts.reshape(-1).astype(jnp.int32)

    eps = 0.2 if smoothing else 0.0                 # eps=0 == F.cross_entropy(mean)
    w_all = (eps / (c - 1)) if c > 1 else 0.0       # guard degenerate C == 1
    w_gt = (1.0 - eps) - w_all

    use_pallas = (c >= 128) if force_pallas is None else force_pallas
    if not use_pallas:
        return _ce_xla(preds, gts, w_gt, w_all)

    per_buf_budget, vmem_limit = _vmem_budgets()
    bytes_per_elt = jnp.dtype(preds.dtype).itemsize

    # Row tile purely from the byte budget (multiple of 8, no hard cap) ...
    tn = max(8, (per_buf_budget // (bytes_per_elt * c)) // 8 * 8)
    n_pad8 = pl.cdiv(n, 8) * 8
    # ... but keep at least two tiles whenever possible so the "parallel" row
    # axis can be split across both v7x TensorCores.
    if n_pad8 >= 16:
        tn = min(tn, max(8, (n_pad8 // 2) // 8 * 8))
    tn = int(min(tn, n_pad8))

    n_pad = pl.cdiv(n, tn) * tn
    num_tiles = n_pad // tn

    gts2d = gts.reshape(n, 1)
    if n_pad != n:
        preds = jnp.pad(preds, ((0, n_pad - n), (0, 0)))
        gts2d = jnp.pad(gts2d, ((0, n_pad - n), (0, 0)))

    kernel = functools.partial(
        _ce_smooth_kernel, w_gt=w_gt, w_all=w_all, n_valid=n, tn=tn
    )

    partials = pl.pallas_call(
        kernel,
        out_shape=jax.ShapeDtypeStruct((num_tiles * 8, 128), jnp.float32),
        grid=(num_tiles,),
        in_specs=[
            pl.BlockSpec((tn, c), lambda i: (i, 0)),   # preds stream (input dtype)
            pl.BlockSpec((tn, 1), lambda i: (i, 0)),   # gts (noise vs. preds, C>=128)
        ],
        out_specs=pl.BlockSpec((8, 128), lambda i: (i, 0)),
        compiler_params=pltpu.CompilerParams(
            dimension_semantics=("parallel",),
            vmem_limit_bytes=vmem_limit,
        ),
    )(preds, gts2d)

    # Tiny epilogue: reduce the per-tile partial sums, mean over the true N.
    return jnp.sum(partials) / n


def _ref_loss(preds, gts, smoothing):
    """Pure-JAX reference matching the PyTorch module."""
    preds = preds.astype(jnp.float32)
    c = preds.shape[1]
    log_prb = jax.nn.log_softmax(preds, axis=1)
    if smoothing:
        eps = 0.2
        one_hot = jax.nn.one_hot(gts, c, dtype=jnp.float32)
        one_hot = one_hot * (1 - eps) + (1 - one_hot) * eps / (c - 1)
        return -(one_hot * log_prb).sum(axis=1).mean()
    return -jnp.take_along_axis(log_prb, gts[:, None], axis=1).mean()


if __name__ == "__main__":
    key = jax.random.PRNGKey(0)
    k1, k2, k3, k4, k5, k6 = jax.random.split(key, 6)

    # Case 1: spec-consistent small shape (N=8, C=32), smoothed, forced through
    # the Pallas kernel (default dispatch would use the small-C XLA fallback).
    N1, C1 = 8, 32
    preds1 = jax.random.normal(k1, (N1, C1), dtype=jnp.float32)
    gts1 = jax.random.randint(k2, (N1,), 0, C1, dtype=jnp.int32)
    loss1 = cross_entropy_loss(preds1, gts1, smoothing=True, force_pallas=True)
    jax.block_until_ready(loss1)
    ref1 = _ref_loss(preds1, gts1, True)
    assert jnp.allclose(loss1, ref1, rtol=1e-5, atol=1e-5), (loss1, ref1)

    # Case 2: N not a multiple of the row tile (padding/masking path) and the
    # smoothing=False branch, still through the Pallas kernel.
    N2, C2 = 13, 32
    preds2 = jax.random.normal(k3, (N2, C2), dtype=jnp.float32)
    gts2 = jax.random.randint(k4, (N2,), 0, C2, dtype=jnp.int32)
    loss2 = cross_entropy_loss(preds2, gts2, smoothing=False, force_pallas=True)
    jax.block_until_ready(loss2)
    ref2 = _ref_loss(preds2, gts2, False)
    assert jnp.allclose(loss2, ref2, rtol=1e-5, atol=1e-5), (loss2, ref2)

    # Case 3: lane-filling class count (C=256) goes through the Pallas kernel
    # by default; also exercises the >=2-tile (megacore) grid split.
    N3, C3 = 12, 256
    preds3 = jax.random.normal(k5, (N3, C3), dtype=jnp.float32)
    gts3 = jax.random.randint(k6, (N3,), 0, C3, dtype=jnp.int32)
    loss3 = cross_entropy_loss(preds3, gts3, smoothing=True)
    jax.block_until_ready(loss3)
    ref3 = _ref_loss(preds3, gts3, True)
    assert jnp.allclose(loss3, ref3, rtol=1e-5, atol=1e-5), (loss3, ref3)

    print("KERNEL_OK")
</pallas_src>

<mosaic_0001>
module attributes {stable_mosaic.version = 11 : i64} {
  func.func @_ce_smooth_kernel(%arg0: i32, %arg1: memref<8x32xf32, #tpu.memory_space<vmem>>, %arg2: memref<8x1xi32, #tpu.memory_space<vmem>>, %arg3: memref<8x128xf32, #tpu.memory_space<vmem>>) attributes {dimension_semantics = [#tpu.dimension_semantics<parallel>], iteration_bounds = array<i64: 1>, scalar_prefetch = 0 : i64, scratch_operands = 0 : i64, tpu.core_type = #tpu.core_type<tc>, window_params = [{transform_indices = @transform_0, window_bounds = array<i64: 8, 32>}, {transform_indices = @transform_1, window_bounds = array<i64: 8, 1>}, {transform_indices = @transform_2, window_bounds = array<i64: 8, 128>}]} {
    %c0 = arith.constant 0 : index
    %c0_0 = arith.constant 0 : index
    %0 = vector.load %arg1[%c0, %c0_0] : memref<8x32xf32, #tpu.memory_space<vmem>>, vector<8x32xf32>
    %c0_1 = arith.constant 0 : index
    %c0_2 = arith.constant 0 : index
    %1 = vector.load %arg2[%c0_1, %c0_2] : memref<8x1xi32, #tpu.memory_space<vmem>>, vector<8x1xi32>
    %2 = tpu.iota {dimensions = array<i32: 1>} : vector<1x32xi32>
    %cst = arith.constant dense<0xFF800000> : vector<8xf32>
    %3 = vector.multi_reduction <maximumf>, %0, %cst [1] : vector<8x32xf32> to vector<8xf32>
    %4 = vector.shape_cast %3 : vector<8xf32> to vector<8x1xf32>
    %5 = vector.broadcast %4 : vector<8x1xf32> to vector<8x32xf32>
    %6 = arith.subf %0, %5 : vector<8x32xf32>
    %7 = math.exp %6 : vector<8x32xf32>
    %cst_3 = arith.constant dense<0.000000e+00> : vector<8xf32>
    %8 = vector.multi_reduction <add>, %7, %cst_3 [1] : vector<8x32xf32> to vector<8xf32>
    %9 = vector.shape_cast %8 : vector<8xf32> to vector<8x1xf32>
    %10 = math.log %9 : vector<8x1xf32>
    %11 = arith.addf %4, %10 : vector<8x1xf32>
    %12 = vector.broadcast %2 : vector<1x32xi32> to vector<8x32xi32>
    %13 = vector.broadcast %1 : vector<8x1xi32> to vector<8x32xi32>
    %14 = arith.cmpi eq, %12, %13 : vector<8x32xi32>
    %c0_i32 = arith.constant 0 : i32
    %15 = arith.sitofp %c0_i32 : i32 to f32
    %16 = vector.broadcast %15 : f32 to vector<8x32xf32>
    %17 = arith.select %14, %0, %16 : vector<8x32xi1>, vector<8x32xf32>
    %cst_4 = arith.constant dense<0.000000e+00> : vector<8xf32>
    %18 = vector.multi_reduction <add>, %17, %cst_4 [1] : vector<8x32xf32> to vector<8xf32>
    %19 = vector.shape_cast %18 : vector<8xf32> to vector<8x1xf32>
    %cst_5 = arith.constant dense<0.000000e+00> : vector<8xf32>
    %20 = vector.multi_reduction <add>, %0, %cst_5 [1] : vector<8x32xf32> to vector<8xf32>
    %21 = vector.shape_cast %20 : vector<8xf32> to vector<8x1xf32>
    %22 = arith.subf %19, %11 : vector<8x1xf32>
    %cst_6 = arith.constant 0.793548405 : f32
    %23 = vector.broadcast %cst_6 : f32 to vector<8x1xf32>
    %24 = arith.mulf %23, %22 : vector<8x1xf32>
    %cst_7 = arith.constant 3.200000e+01 : f32
    %25 = vector.broadcast %cst_7 : f32 to vector<8x1xf32>
    %26 = arith.mulf %25, %11 : vector<8x1xf32>
    %27 = arith.subf %21, %26 : vector<8x1xf32>
    %cst_8 = arith.constant 0.0064516128 : f32
    %28 = vector.broadcast %cst_8 : f32 to vector<8x1xf32>
    %29 = arith.mulf %28, %27 : vector<8x1xf32>
    %30 = arith.addf %24, %29 : vector<8x1xf32>
    %cst_9 = arith.constant 0.000000e+00 : f32
    %31 = vector.broadcast %cst_9 : f32 to vector<8x1xf32>
    %32 = arith.subf %31, %30 : vector<8x1xf32>
    %c8_i32 = arith.constant 8 : i32
    %33 = arith.muli %arg0, %c8_i32 : i32
    %34 = tpu.iota {dimensions = array<i32: 0>} : vector<8x1xi32>
    %35 = vector.broadcast %33 : i32 to vector<8x1xi32>
    %36 = arith.addi %35, %34 : vector<8x1xi32>
    %c8_i32_10 = arith.constant 8 : i32
    %37 = vector.broadcast %c8_i32_10 : i32 to vector<8x1xi32>
    %38 = arith.cmpi slt, %36, %37 : vector<8x1xi32>
    %cst_11 = arith.constant 0.000000e+00 : f32
    %39 = vector.broadcast %cst_11 : f32 to vector<8x1xf32>
    %40 = arith.select %38, %32, %39 : vector<8x1xi1>, vector<8x1xf32>
    %41 = vector.shape_cast %40 : vector<8x1xf32> to vector<1x8x1xf32>
    %cst_12 = arith.constant dense<0.000000e+00> : vector<1xf32>
    %42 = vector.multi_reduction <add>, %41, %cst_12 [1, 2] : vector<1x8x1xf32> to vector<1xf32>
    %43 = vector.shape_cast %42 : vector<1xf32> to vector<1x1x1xf32>
    %44 = vector.extract %43[0, 0, 0] : f32 from vector<1x1x1xf32>
    %45 = tpu.iota {dimensions = array<i32: 0>} : vector<8x128xi32>
    %46 = tpu.iota {dimensions = array<i32: 1>} : vector<8x128xi32>
    %c0_i32_13 = arith.constant 0 : i32
    %47 = vector.broadcast %c0_i32_13 : i32 to vector<8x128xi32>
    %48 = arith.cmpi eq, %45, %47 : vector<8x128xi32>
    %c0_i32_14 = arith.constant 0 : i32
    %49 = vector.broadcast %c0_i32_14 : i32 to vector<8x128xi32>
    %50 = arith.cmpi eq, %46, %49 : vector<8x128xi32>
    %51 = arith.andi %48, %50 : vector<8x128xi1>
    %cst_15 = arith.constant 0.000000e+00 : f32
    %52 = vector.broadcast %44 : f32 to vector<8x128xf32>
    %53 = vector.broadcast %cst_15 : f32 to vector<8x128xf32>
    %54 = arith.select %51, %52, %53 : vector<8x128xi1>, vector<8x128xf32>
    %c0_16 = arith.constant 0 : index
    %c0_17 = arith.constant 0 : index
    %55 = vector.load %arg3[%c0_16, %c0_17] : memref<8x128xf32, #tpu.memory_space<vmem>>, vector<8x128xf32>
    tpu.vector_store %arg3[%c0_16, %c0_17], %54 {strides = array<i32>} : memref<8x128xf32, #tpu.memory_space<vmem>>, vector<8x128xf32>,
    return
  }
  func.func @transform_0(%arg0: i32) -> (i32, i32) {
    %c0_i32 = arith.constant 0 : i32
    %c0_i32_0 = arith.constant 0 : i32
    return %arg0, %c0_i32 : i32, i32
  }
  func.func @transform_1(%arg0: i32) -> (i32, i32) {
    %c0_i32 = arith.constant 0 : i32
    %c0_i32_0 = arith.constant 0 : i32
    return %arg0, %c0_i32 : i32, i32
  }
  func.func @transform_2(%arg0: i32) -> (i32, i32) {
    %c0_i32 = arith.constant 0 : i32
    %c0_i32_0 = arith.constant 0 : i32
    return %arg0, %c0_i32 : i32, i32
  }
}

</mosaic_0001>

<bundles_post_ra>
// kernel: tpu_custom_call.1
= control target key start
LH: loop header
LB: loop body
LE: loop exit
PB: predicated region body
PF: predicated region fallthrough
CT: control target
= control target key end

     0   :  { %vm16_vm0 = vcmask 261120   ;;  %s157_s0 = inlined_call_operand.vmem [shape: f32[8,32], index: 0, kind: input, shape index: {}]   ;;  %s158_s1 = inlined_call_operand.vmem [shape: s32[8,1], index: 1, kind: input, shape index: {}]   ;;  %s159_s2 = inlined_call_operand.hbm [shape: f32[8,128], index: 2, kind: output, shape index: {}]  }
   0x1   :  { %v12_v0 = vld [vmem:[%s157_s0] sm:$0xff] }
   0x2   :  { %7 = vsyncpa [#allocation3], 0  ;;  %v17_v1 = vsel %vm16_vm0, %v12_v0, -inf  ;;  %v118_v2 = vmov 0   ;;  %v13_v3 = vld [vmem:[%s158_s1] sm:$0xff]  ;;  %v14_v7 = vlaneseq  ;;  %v37_v14 = vsel %vm16_vm0, %v12_v0, 0.0 }
   0x3   :  { %89 = vset.pattern.permute.xlu0 %v118_v2  ;;  %vm54_vm2 = vcmask 7168   ;;  %s119_s0 = smov [#allocation2]  }
   0x4   :  { %18 = vmax.xlane.f32.xlu0 %v17_v1  ;;  %v15_v8 = vand.u32 127, %v14_v7  ;;  %v49_v36 = vshrl.u32 %v14_v7, 7  ;;  %s77_s1 = sshll.u32 %s119_s0, 4  ;;  %s78_s1 = int_to_ptr.vmem [resolvable:$true] %s77_s1 }
   0x5   :  { %s94_s14 = scalar_lea.vmem %s78_s1, 128  ;;  %p99_p1 = scmp.lt.s32.totalorder %s78_s1, %s78_s1 }
   0x6   :  { %vm65_vm3 = vcmp.eq.s32.totalorder %v49_v36, 0  ;;  %vm66_vm4 = vcmp.eq.s32.totalorder %v15_v8, 0  ;;  %p95_p0 = scmp.ne.s32.totalorder %s78_s1, %s94_s14  ;;  %p100_p2 = scmp.lt.s32.totalorder %s94_s14, %s94_s14 }
   0x7   :  { %vm67_vm5 = vmand %vm65_vm3, %vm66_vm4 }
   0x8   :  { %p101_p3 = por %p100_p2, %p99_p1 }
   0xa   :  { %p102_p4 = pnand %p101_p3, %p95_p0 }
  0x1a   :  { %30 = vperm.xlu0 %89, %v13_v3  }
  0x91   :  { %v19_v4 = vpop.xlane.xlu0 %18 }
  0x92   :  { %v20_v5 = vsub.f32 %v12_v0, %v19_v4 }
  0x94   :  { %v21_v6 = vmul.f32 1.442695, %v20_v5 }
  0x96   :  { %90 = vpow2.f32 %v21_v6 }
  0x99   :  { %v31_v9 = vpop.permute.xlu0 %30 }
  0x9a   :  { %vm32_vm1 = vcmp.eq.s32.totalorder %v15_v8, %v31_v9 }
  0x9b   :  { %v33_v11 = vsel %vm32_vm1, %v12_v0, 0.0 }
  0x9c   :  { %v34_v13 = vsel %vm16_vm0, %v33_v11, 0.0 }
  0xa0   :  { %v91_v10 = vpop.eup %90 }
  0xa1   :  { %v23_v12 = vsel %vm16_vm0, %v91_v10, 0.0 }
  0xa2   :  { %24 = vadd.xlane.f32.xlu1 %v23_v12 }
  0xa6   :  { %35 = vadd.xlane.f32.xlu1 %v34_v13 }
  0xaa   :  { %38 = vadd.xlane.f32.xlu1 %v37_v14 }
 0x12f   :  { %v25_v15 = vpop.xlane.xlu1 %24 }
 0x130   :  { %92 = vlog2.f32 %v25_v15 }
 0x133   :  { %v36_v16 = vpop.xlane.xlu1 %35 }
 0x137   :  { %v39_v20 = vpop.xlane.xlu1 %38 }
 0x13a   :  { %v93_v17 = vpop.eup %92 }
 0x13b   :  { %v27_v18 = vmul.f32 0.6931472, %v93_v17 }
 0x13d   :  { %v28_v19 = vadd.f32 %v27_v18, %v19_v4 }
 0x13f   :  { %v40_v21 = vsub.f32 %v36_v16, %v28_v19  ;;  %v42_v22 = vmul.f32 32.0, %v28_v19 }
 0x141   :  { %v43_v23 = vsub.f32 %v39_v20, %v42_v22  ;;  %v41_v24 = vmul.f32 0.7935484, %v40_v21 }
 0x143   :  { %v44_v25 = vmul.f32 0.006451613, %v43_v23 }
 0x145   :  { %v45_v26 = vadd.f32 %v44_v25, %v41_v24 }
 0x147   :  { %v46_v27 = vsub.f32 0.0, %v45_v26 }
 0x149   :  { %v55_v28 = vsel %vm54_vm2, %v46_v27, 0.0 }
 0x14a   :  { %56 = vadd.xlane.f32.xlu1 %v55_v28 }
 0x1d7   :  { %v57_v29 = vpop.xlane.xlu1 %56 }
 0x1d8   :  { %v58_v30 = vrot.slane %v57_v29, 4 }
 0x1da   :  { %v59_v31 = vadd.f32 %v58_v30, %v57_v29 }
 0x1dc   :  { %v60_v32 = vrot.slane %v59_v31, 2 }
 0x1de   :  { %v61_v33 = vadd.f32 %v60_v32, %v59_v31 }
 0x1e0   :  { %v62_v34 = vrot.slane %v61_v33, 1 }
 0x1e2   :  { %v63_v35 = vadd.f32 %v62_v34, %v61_v33 }
 0x1e4   :  { %85 = vpush %v63_v35 }
 0x215   :  { %s86_s13 = spop %85 }
 0x216   :  { %v68_v37 = vstv %s86_s13 }
 0x217   :  { %v69_v38 = vsel %vm67_vm5, %v68_v37, 0.0 }
 0x218   :  { %70 = vst [vmem:[#allocation2] sm:$0xff] %v69_v38 }
 0x219   :  { %105 = shalt.err (!%p102_p4)
}
 0x21a   :  { %s106_s17 = scalar_lea.hbm %s159_s2, 128 }
 0x21b   :  { %p107_p5 = scmp.ne.s32.totalorder %s159_s2, %s106_s17  ;;  %p110_p6 = scmp.lt.u32.totalorder %s106_s17, %s159_s2 }
 0x21d   :  { %p112_p7 = pnand %p110_p6, %p107_p5 }
 0x21f   :  { %115 = shalt.err (!%p112_p7)
}
 0x220   :  { %80 = dma.vmem_to_hbm [thread:$0]  %s78_s1, 128, %s159_s2, [#allocation3]  }
 0x221   :  { %116 = dma.done.wait [#allocation3], 128  }
 0x222   :  { %117 = vsyncadd [#allocation3], 4294967168 }
 0x223   :  { %84 = vsyncpa [#allocation3], 1 }

</bundles_post_ra>
